<compile_context>
chip_gen: v6e
topology: v6e:2x2x1
jax: 0.10.0
libtpu: 0.0.40
codegen_flags: <defaults>
</compile_context>

<pallas_src>
import jax
import jax.numpy as jnp
from jax.experimental import pallas as pl
from jax.experimental.pallas import tpu as pltpu


def _round_up(x, m):
    return ((x + m - 1) // m) * m


def _pick_pixel_tile(P, B, *, max_tn=1024, min_tn=512):
    """Pixel tile tn (multiple of 128) and padded pixel count P_pad (multiple of tn)."""
    P128 = _round_up(P, 128)
    if P128 <= max_tn:
        tn = P128
    else:
        best = None
        t = max_tn
        while t >= min_tn:
            padded = _round_up(P128, t)
            key = (padded, -t)            # least total padding, then biggest tile
            if best is None or key < best[0]:
                best = (key, t)
            t -= 128
        tn = best[1]
    P_pad = _round_up(P128, tn)
    # Megacore (v7x has 2 TCs): guarantee >= 2 grid steps so one core is never idle.
    if B * (P_pad // tn) < 2 and tn >= 256:
        tn = _round_up(tn // 2, 128)
        P_pad = _round_up(P128, tn)
    return tn, P_pad


def _fuse_weights(params, C1, C2, inner, C1_pad, K_pad, mm_dtype):
    """Fused weight (2*inner, K_pad): [x-weights | bias col | 0 | h-weights | 0]."""
    W = jnp.zeros((2 * inner, K_pad), jnp.float32)
    W = W.at[:inner, 0:C1].set(params["w_x_r"].T)
    W = W.at[inner:, 0:C1].set(params["w_x"].T)
    W = W.at[:inner, C1].set(params["b_x_r"] + params["b_h_r"])   # bias column (ones row)
    W = W.at[inner:, C1].set(params["b_x"] + params["b_u"])
    W = W.at[:inner, C1_pad:C1_pad + C2].set(params["w_h_r"].T)
    W = W.at[inner:, C1_pad:C1_pad + C2].set(params["w_u"].T)
    return W.astype(mm_dtype)


def _make_kernel(C1, C2, inner, C1_pad, K_pad, tn, mm_dtype, use_highest):
    def kernel(x_ref, h_ref, w_ref, o_ref, xh_ref):
        # x_ref: (1, C1, tn)  h_ref: (1, C2, tn)  w_ref: (2*inner, K_pad) mm_dtype
        # o_ref: (1, inner, tn)  xh_ref: (K_pad, tn) mm_dtype scratch
        #
        # Assemble the fused activation stack [x ; 1 ; 0pad ; h ; 0pad] in mm_dtype.
        # (Stores are rewritten every step so the layout is correct regardless of
        #  how the grid is sharded across TensorCores.)
        xh_ref[0:C1, :] = x_ref[0].astype(mm_dtype)
        row = jax.lax.broadcasted_iota(jnp.int32, (C1_pad - C1, tn), 0)
        xh_ref[C1:C1_pad, :] = jnp.where(row == 0, 1.0, 0.0).astype(mm_dtype)  # ones row + zero pad
        xh_ref[C1_pad:C1_pad + C2, :] = h_ref[0].astype(mm_dtype)
        if C1_pad + C2 < K_pad:
            xh_ref[C1_pad + C2:K_pad, :] = jnp.zeros((K_pad - C1_pad - C2, tn), mm_dtype)

        # Single fused MXU matmul: [pre_r ; h_hat] = W_fused @ [x ; 1 ; 0 ; h ; 0], f32 accumulation.
        dot_kwargs = dict(preferred_element_type=jnp.float32)
        if use_highest:
            dot_kwargs["precision"] = jax.lax.Precision.HIGHEST
        pre = jnp.dot(w_ref[...], xh_ref[...], **dot_kwargs)        # (2*inner, tn) f32

        # 3 transcendentals / output element — EUP is the accepted floor here.
        r_t = jax.nn.sigmoid(pre[:inner, :])
        tanh_h = jnp.tanh(h_ref[0].astype(jnp.float32))             # f32 state -> accurate tanh
        tanh_hat = jnp.tanh(pre[inner:, :])
        # r*tanh(h) + (1-r)*tanh(h_hat) == tanh(h_hat) + r*(tanh(h) - tanh(h_hat))
        o_ref[0] = (tanh_hat + r_t * (tanh_h - tanh_hat)).astype(o_ref.dtype)

    return kernel


def convgru_pallas(x_nchw, h_nchw, params, *, mm_dtype=jnp.bfloat16, tn=None, max_tn=1024):
    """x_nchw: (B, C1, H, W); h_nchw: (B, C2, H, W); returns (B, inner, H, W)."""
    B, C1, H, W = x_nchw.shape
    Bh, C2, Hh, Wh = h_nchw.shape
    inner = params["w_x_r"].shape[1]
    assert (Bh, Hh, Wh) == (B, H, W)
    assert C2 == inner, "torch.mul(r_t, tanh(h_t_1)) requires in_channels2 == inner"
    assert inner % 8 == 0, "inner must be a multiple of 8 (sublane-aligned gate/candidate split)"

    mm_dtype = jnp.dtype(mm_dtype)
    out_dtype = x_nchw.dtype
    use_highest = mm_dtype == jnp.dtype(jnp.float32)
    seg = 16 if mm_dtype.itemsize < 4 else 8
    C1_pad = _round_up(C1 + 1, seg)                   # x rows + bias(=1) row, aligned
    K_pad = C1_pad + _round_up(C2, seg)

    # Zero-copy reshape NCHW -> (B, C, P); pixels -> 128-wide lanes. No wrapper-side
    # dtype casts: any cast for the matmul happens inside the kernel.
    P = H * W
    x3 = x_nchw.reshape(B, C1, P)
    h3 = h_nchw.reshape(B, C2, P)

    if tn is None:
        tn, P_pad = _pick_pixel_tile(P, B, max_tn=max_tn)
    else:
        assert tn % 128 == 0
        P_pad = _round_up(P, tn)
    if P_pad != P:
        # Pad pixels up to the tile size (far cheaper than degrading to 128-wide tiles).
        x3 = jnp.pad(x3, ((0, 0), (0, 0), (0, P_pad - P)))
        h3 = jnp.pad(h3, ((0, 0), (0, 0), (0, P_pad - P)))

    w_fused = _fuse_weights(params, C1, C2, inner, C1_pad, K_pad, mm_dtype)

    in_is = jnp.dtype(x_nchw.dtype).itemsize
    out_is = jnp.dtype(out_dtype).itemsize
    mm_is = mm_dtype.itemsize

    # Per-step VMEM budget: double-buffered I/O tiles + resident weight + xh scratch
    # + f32 intermediates, with 2x headroom, capped at v7x's 64 MiB per-TC VMEM.
    vmem_est = (2 * (C1 + C2) * tn * in_is
                + 2 * inner * tn * out_is
                + 2 * (2 * inner) * K_pad * mm_is
                + K_pad * tn * mm_is
                + 8 * inner * tn * 4)
    vmem_limit = int(min(64 << 20, max(32 << 20, 2 * vmem_est)))

    cost = pl.CostEstimate(
        flops=2 * B * P_pad * K_pad * (2 * inner),
        transcendentals=3 * B * P_pad * inner,
        bytes_accessed=B * P_pad * ((C1 + C2) * in_is + inner * out_is)
                       + 2 * inner * K_pad * mm_is,
    )

    kernel = _make_kernel(C1, C2, inner, C1_pad, K_pad, tn, mm_dtype, use_highest)

    out3 = pl.pallas_call(
        kernel,
        out_shape=jax.ShapeDtypeStruct((B, inner, P_pad), out_dtype),
        grid=(B, P_pad // tn),
        in_specs=[
            pl.BlockSpec((1, C1, tn), lambda b, j: (b, 0, j)),        # x tile
            pl.BlockSpec((1, C2, tn), lambda b, j: (b, 0, j)),        # h tile
            pl.BlockSpec((2 * inner, K_pad), lambda b, j: (0, 0)),    # fused W+bias (VMEM-resident)
        ],
        out_specs=pl.BlockSpec((1, inner, tn), lambda b, j: (b, 0, j)),
        scratch_shapes=[pltpu.VMEM((K_pad, tn), mm_dtype)],
        compiler_params=pltpu.CompilerParams(
            dimension_semantics=("parallel", "parallel"),
            vmem_limit_bytes=vmem_limit),
        cost_estimate=cost,
    )(x3, h3, w_fused)

    if P_pad != P:
        out3 = out3[:, :, :P]
    return out3.reshape(B, inner, H, W)


def init_params(key, in_channels1, in_channels2, inner):
    """Deterministic init of the four 1x1 conv layers (weight (Cin, inner), bias (inner,))."""
    ks = jax.random.split(key, 8)
    scale1 = 1.0 / jnp.sqrt(in_channels1)
    scale2 = 1.0 / jnp.sqrt(in_channels2)
    return {
        "w_x_r": jax.random.uniform(ks[0], (in_channels1, inner), jnp.float32, -scale1, scale1),
        "b_x_r": jax.random.uniform(ks[1], (inner,), jnp.float32, -scale1, scale1),
        "w_h_r": jax.random.uniform(ks[2], (in_channels2, inner), jnp.float32, -scale2, scale2),
        "b_h_r": jax.random.uniform(ks[3], (inner,), jnp.float32, -scale2, scale2),
        "w_x":   jax.random.uniform(ks[4], (in_channels1, inner), jnp.float32, -scale1, scale1),
        "b_x":   jax.random.uniform(ks[5], (inner,), jnp.float32, -scale1, scale1),
        "w_u":   jax.random.uniform(ks[6], (in_channels2, inner), jnp.float32, -scale2, scale2),
        "b_u":   jax.random.uniform(ks[7], (inner,), jnp.float32, -scale2, scale2),
    }


def convgru_ref(x_nchw, h_nchw, params):
    """Pure-JAX reference matching the PyTorch forward exactly."""
    def conv1x1(v, w, b):  # v: (B, Cin, H, W), w: (Cin, Cout), b: (Cout,)
        y = jnp.einsum("bchw,cd->bdhw", v, w, precision=jax.lax.Precision.HIGHEST)
        return y + b[None, :, None, None]

    r_t = jax.nn.sigmoid(conv1x1(x_nchw, params["w_x_r"], params["b_x_r"])
                         + conv1x1(h_nchw, params["w_h_r"], params["b_h_r"]))
    h_hat = (conv1x1(x_nchw, params["w_x"], params["b_x"])
             + conv1x1(h_nchw, params["w_u"], params["b_u"]))
    return r_t * jnp.tanh(h_nchw) + (1.0 - r_t) * jnp.tanh(h_hat)


if __name__ == "__main__":
    B, C1, inner, H, W = 2, 4, 32, 16, 16
    C2 = inner  # required by the elementwise mul with r_t

    key = jax.random.PRNGKey(0)
    k_p, k_x, k_h = jax.random.split(key, 3)
    params = init_params(k_p, C1, C2, inner)
    x = jax.random.normal(k_x, (B, C1, H, W), jnp.float32)
    h_t_1 = jax.random.normal(k_h, (B, C2, H, W), jnp.float32)

    ref = jax.block_until_ready(convgru_ref(x, h_t_1, params))

    # Default path: bf16 MXU operands (in-kernel cast), f32 accumulation, f32 state/tanh.
    out_bf = jax.block_until_ready(convgru_pallas(x, h_t_1, params))
    assert out_bf.shape == (B, inner, H, W)
    err_bf = float(jnp.max(jnp.abs(out_bf.astype(jnp.float32) - ref)))
    assert err_bf < 5e-2, f"bf16-matmul mismatch vs reference: {err_bf}"

    # Full-f32 matmul path (precision=HIGHEST): tight tolerance vs the reference.
    out_f32 = jax.block_until_ready(convgru_pallas(x, h_t_1, params, mm_dtype=jnp.float32))
    assert out_f32.shape == (B, inner, H, W)
    assert jnp.allclose(out_f32, ref, atol=2e-5, rtol=2e-5), "f32 mismatch vs reference"

    print("KERNEL_OK")
</pallas_src>

<mosaic_0001>
module attributes {stable_mosaic.version = 11 : i64} {
  func.func @kernel(%arg0: i32, %arg1: i32, %arg2: memref<1x4x256xf32, #tpu.memory_space<vmem>>, %arg3: memref<1x32x256xf32, #tpu.memory_space<vmem>>, %arg4: memref<64x48xbf16, #tpu.memory_space<vmem>>, %arg5: memref<1x32x256xf32, #tpu.memory_space<vmem>>, %arg6: memref<48x256xbf16, #tpu.memory_space<vmem>>) attributes {dimension_semantics = [#tpu.dimension_semantics<parallel>, #tpu.dimension_semantics<parallel>], iteration_bounds = array<i64: 2, 1>, scalar_prefetch = 0 : i64, scratch_operands = 1 : i64, tpu.core_type = #tpu.core_type<tc>, window_params = [{transform_indices = @transform_0, window_bounds = array<i64: 1, 4, 256>}, {transform_indices = @transform_1, window_bounds = array<i64: 1, 32, 256>}, {pipeline_mode = #tpu.pipeline_mode<synchronous>, transform_indices = @transform_2, window_bounds = array<i64: 64, 48>}, {transform_indices = @transform_3, window_bounds = array<i64: 1, 32, 256>}]} {
    %c0 = arith.constant 0 : index
    %c0_0 = arith.constant 0 : index
    %c0_1 = arith.constant 0 : index
    %0 = vector.load %arg2[%c0, %c0_0, %c0_1] : memref<1x4x256xf32, #tpu.memory_space<vmem>>, vector<1x4x256xf32>
    %1 = vector.shape_cast %0 : vector<1x4x256xf32> to vector<4x256xf32>
    %2 = arith.truncf %1 : vector<4x256xf32> to vector<4x256xbf16>
    %c0_2 = arith.constant 0 : index
    %c0_3 = arith.constant 0 : index
    %3 = vector.load %arg6[%c0_2, %c0_3] : memref<48x256xbf16, #tpu.memory_space<vmem>>, vector<4x256xbf16>
    tpu.vector_store %arg6[%c0_2, %c0_3], %2 {strides = array<i32>} : memref<48x256xbf16, #tpu.memory_space<vmem>>, vector<4x256xbf16>,
    %4 = tpu.iota {dimensions = array<i32: 0>} : vector<12x256xi32>
    %c0_i32 = arith.constant 0 : i32
    %5 = vector.broadcast %c0_i32 : i32 to vector<12x256xi32>
    %6 = arith.cmpi eq, %4, %5 : vector<12x256xi32>
    %cst = arith.constant 1.000000e+00 : f32
    %cst_4 = arith.constant 0.000000e+00 : f32
    %7 = vector.broadcast %cst : f32 to vector<12x256xf32>
    %8 = vector.broadcast %cst_4 : f32 to vector<12x256xf32>
    %9 = arith.select %6, %7, %8 : vector<12x256xi1>, vector<12x256xf32>
    %10 = arith.truncf %9 : vector<12x256xf32> to vector<12x256xbf16>
    %c4 = arith.constant 4 : index
    %c0_5 = arith.constant 0 : index
    %11 = vector.load %arg6[%c4, %c0_5] : memref<48x256xbf16, #tpu.memory_space<vmem>>, vector<12x256xbf16>
    tpu.vector_store %arg6[%c4, %c0_5], %10 {strides = array<i32>} : memref<48x256xbf16, #tpu.memory_space<vmem>>, vector<12x256xbf16>,
    %c0_6 = arith.constant 0 : index
    %c0_7 = arith.constant 0 : index
    %c0_8 = arith.constant 0 : index
    %12 = vector.load %arg3[%c0_6, %c0_7, %c0_8] : memref<1x32x256xf32, #tpu.memory_space<vmem>>, vector<1x32x256xf32>
    %13 = vector.shape_cast %12 : vector<1x32x256xf32> to vector<32x256xf32>
    %14 = arith.truncf %13 : vector<32x256xf32> to vector<32x256xbf16>
    %c16 = arith.constant 16 : index
    %c0_9 = arith.constant 0 : index
    %15 = vector.load %arg6[%c16, %c0_9] : memref<48x256xbf16, #tpu.memory_space<vmem>>, vector<32x256xbf16>
    tpu.vector_store %arg6[%c16, %c0_9], %14 {strides = array<i32>} : memref<48x256xbf16, #tpu.memory_space<vmem>>, vector<32x256xbf16>,
    %c0_10 = arith.constant 0 : index
    %c0_11 = arith.constant 0 : index
    %16 = vector.load %arg4[%c0_10, %c0_11] : memref<64x48xbf16, #tpu.memory_space<vmem>>, vector<64x48xbf16>
    %c0_12 = arith.constant 0 : index
    %c0_13 = arith.constant 0 : index
    %17 = vector.load %arg6[%c0_12, %c0_13] : memref<48x256xbf16, #tpu.memory_space<vmem>>, vector<48x256xbf16>
    %cst_14 = arith.constant dense<0.000000e+00> : vector<64x256xf32>
    %18 = tpu.matmul %16, %17, %cst_14 {dimension_numbers = #tpu.dot_dimension_numbers<[1], [0], [0], [1], [0, 0, 1, 1], [], []>} : vector<64x48xbf16>, vector<48x256xbf16>, vector<64x256xf32> -> vector<64x256xf32>
    %19 = vector.extract_strided_slice %18 {offsets = [0, 0], sizes = [32, 256], strides = [1, 1]} : vector<64x256xf32> to vector<32x256xf32>
    %20 = arith.negf %19 : vector<32x256xf32>
    %21 = math.exp %20 : vector<32x256xf32>
    %cst_15 = arith.constant 1.000000e+00 : f32
    %22 = vector.broadcast %cst_15 : f32 to vector<32x256xf32>
    %23 = arith.addf %22, %21 : vector<32x256xf32>
    %24 = arith.divf %22, %23 : vector<32x256xf32>
    %c0_16 = arith.constant 0 : index
    %c0_17 = arith.constant 0 : index
    %c0_18 = arith.constant 0 : index
    %25 = vector.load %arg3[%c0_16, %c0_17, %c0_18] : memref<1x32x256xf32, #tpu.memory_space<vmem>>, vector<1x32x256xf32>
    %26 = vector.shape_cast %25 : vector<1x32x256xf32> to vector<32x256xf32>
    %27 = math.tanh %26 : vector<32x256xf32>
    %28 = vector.extract_strided_slice %18 {offsets = [32, 0], sizes = [32, 256], strides = [1, 1]} : vector<64x256xf32> to vector<32x256xf32>
    %29 = math.tanh %28 : vector<32x256xf32>
    %30 = arith.subf %27, %29 : vector<32x256xf32>
    %31 = arith.mulf %24, %30 : vector<32x256xf32>
    %32 = arith.addf %29, %31 : vector<32x256xf32>
    %c0_19 = arith.constant 0 : index
    %c0_20 = arith.constant 0 : index
    %c0_21 = arith.constant 0 : index
    %33 = vector.load %arg5[%c0_19, %c0_20, %c0_21] : memref<1x32x256xf32, #tpu.memory_space<vmem>>, vector<1x32x256xf32>
    %34 = vector.shape_cast %33 : vector<1x32x256xf32> to vector<32x256xf32>
    %35 = vector.shape_cast %32 : vector<32x256xf32> to vector<1x32x256xf32>
    tpu.vector_store %arg5[%c0_19, %c0_20, %c0_21], %35 {strides = array<i32>} : memref<1x32x256xf32, #tpu.memory_space<vmem>>, vector<1x32x256xf32>,
    return
  }
  func.func @transform_0(%arg0: i32, %arg1: i32) -> (i32, i32, i32) {
    %c0_i32 = arith.constant 0 : i32
    %c0_i32_0 = arith.constant 0 : i32
    return %arg0, %c0_i32, %arg1 : i32, i32, i32
  }
  func.func @transform_1(%arg0: i32, %arg1: i32) -> (i32, i32, i32) {
    %c0_i32 = arith.constant 0 : i32
    %c0_i32_0 = arith.constant 0 : i32
    return %arg0, %c0_i32, %arg1 : i32, i32, i32
  }
  func.func @transform_2(%arg0: i32, %arg1: i32) -> (i32, i32) {
    %c0_i32 = arith.constant 0 : i32
    %c0_i32_0 = arith.constant 0 : i32
    %c0_i32_1 = arith.constant 0 : i32
    return %c0_i32, %c0_i32_0 : i32, i32
  }
  func.func @transform_3(%arg0: i32, %arg1: i32) -> (i32, i32, i32) {
    %c0_i32 = arith.constant 0 : i32
    %c0_i32_0 = arith.constant 0 : i32
    return %arg0, %c0_i32, %arg1 : i32, i32, i32
  }
}

</mosaic_0001>

<bundles_post_ra>
// kernel: tpu_custom_call.1
= control target key start
LH: loop header
LB: loop body
LE: loop exit
PB: predicated region body
PF: predicated region fallthrough
CT: control target
= control target key end

     0   :  { %8 = vsyncpa [#allocation4], 0  ;;  %s1259_s0 = inlined_call_operand.vmem [shape: f32[2,4,256], index: 0, kind: input, shape index: {}]   ;;  %s1260_s1 = inlined_call_operand.hbm [shape: f32[2,32,256], index: 1, kind: input, shape index: {}]   ;;  %s1261_s2 = inlined_call_operand.vmem [shape: bf16[64,48], index: 2, kind: input, shape index: {}]   ;;  %s1262_s3 = inlined_call_operand.hbm [shape: f32[2,32,256], index: 3, kind: output, shape index: {}]  }
   0x1   :  { %10 = vsyncpa [#allocation4 + $0x1], 0 }
   0x2   :  { %11 = vsyncpa [#allocation5], 0 }
   0x3   :  { %13 = vsyncpa [#allocation5 + $0x1], 0  ;;  %s1045_s12 = smov 0   ;;  %s1047_s13 = smov 0  }
   0x4   :  { %s1049_s14 = smov 0   ;;  %s1051_s15 = smov 0  }
   0x5   :  { %s1053_s16 = smov 0   ;;  %s1055_s17 = smov 0  }
   0x6 LB: > { %s704_s18 = sadd.s32 4294967295, %s1013_s17   ;;  %s705_s19 = sadd.s32 4294967294, %s1013_s17   ;;  %s1013_s17 = sphi %s1055_s17, %s19_s17   ;;  %s1009_s16 = sphi %s1053_s16, %s1273_s16   ;;  %s1005_s15 = sphi %s1051_s15, %s1272_s15   ;;  %s1001_s14 = sphi %s1049_s14, %s1271_s14   ;;  %s997_s13 = sphi %s1047_s13, %s1270_s13   ;;  %s993_s12 = sphi %s1045_s12, %s1269_s12  }
   0x7   : > { %s31_s20 = sadd.s32 1, %s1009_s16  ;;  %s68_s21 = sadd.s32 1, %s1001_s14 }
   0x8   : > { %p33_p0 = scmp.ge.s32.totalorder %s31_s20, 2  ;;  %p75_p1 = scmp.ne.s32.totalorder %s1001_s14, %s997_s13 }
   0x9   : > { %p76_p2 = scmp.eq.s32.totalorder %s1013_s17, 0  ;;  %p81_p3 = scmp.ne.s32.totalorder %s997_s13, %s993_s12 }
   0xa   : > { %s1275_s20 = smov (%p33_p0, %s31_s20), 0  ;;  %p82_p5 = scmp.eq.s32.totalorder %s704_s18, 0 }
   0xb   : > { %p1086_p4 = por %p76_p2, %p75_p1  ;;  %s63_s23 = ssub.s32 %s1009_s16, %s1275_s20 }
   0xc   : > { %p128_p6 = scmp.eq.s32.totalorder %s704_s18, 1  ;;  %p66_p7 = scmp.eq.s32.totalorder %s63_s23, 0 }
   0xd   : > { %p1092_p8 = por %p82_p5, %p81_p3  ;;  %p134_p10 = scmp.eq.s32.totalorder %s705_s19, 1 }
   0xe   : > { %p1096_p9 = por %p128_p6, %p75_p1  ;;  %p774_p13 = scmp.lt.s32.totalorder %s1013_s17, 2 }
   0xf   : > { %s1101_s26 = scalar_select %p66_p7, %s1001_s14, %s68_s21  }
  0x10   : > { %p1103_p11 = por %p134_p10, %p81_p3  ;;  %s170_s28 = sand.u32 1, %s1001_s14  }
  0x11   : > { %s708_s29 = sshll.u32 %s170_s28, 6  ;;  %s748_s30 = sshll.u32 %s1009_s16, 10 }
  0x12   : > { %s182_s6 = scalar_lea.hbm %s1260_s1, %s748_s30  ;;  %s174_s7 = scalar_lea.vmem [#allocation3], %s708_s29 }
  0x13   : > { %s183_s8 = sshll.u32 %s174_s7, 4  ;;  %p1116_p0 = pnand %p774_p13, %p1086_p4  ;;  %s184_s8 = int_to_ptr.vmem [resolvable:$true] %s183_s8 }
  0x14   : > { %p711_p1 = scmp.ge.s32.totalorder %s1013_s17, 1  ;;  %s171_s10 = scalar_lea.sflag [#allocation4], %s170_s28 }
  0x15   : > { %p907_p2 = pneg %p1116_p0  ;;  %s918_s11 = scalar_lea.vmem %s184_s8, 1024 }
  0x16   : > { %p919_p3 = scmp.ne.s32.totalorder %s184_s8, %s918_s11  ;;  %s1015_s18 = smov [#allocation3]  }
  0x17   : > { %s923_s19 = sshll.u32 %s1015_s18, 4  ;;  %s924_s19 = int_to_ptr.vmem [resolvable:$false] %s923_s19 }
  0x18   : > { %p921_p5 = pnand %p919_p3, %p907_p2  ;;  %s925_s21 = scalar_lea.vmem %s924_s19, 2048 }
  0x19   : > { %p926_p7 = scmp.lt.s32.totalorder %s184_s8, %s924_s19  ;;  %p927_p10 = scmp.lt.s32.totalorder %s925_s21, %s918_s11 }
  0x1a   : > { %p922_p6 = pneg %p921_p5 }
  0x1b   : > { %p928_p12 = por %p927_p10, %p926_p7 }
  0x1d   : > { %p929_p4 = pnand %p928_p12, %p922_p6 }
  0x1f   : > { %932 = shalt.err (!%p929_p4)
}
  0x20   : > { %s1016_s22 = smov 256   ;;  %s1017_s23 = smov 16  }
  0x21   : > { %769 = dma.hbm_to_vmem [thread:$0]  (!%p1116_p0), %s182_s6, 1024, %s184_s8, %s171_s10, %s1016_s22, %s1016_s22, %s1017_s23  }
  0x22   : > { %p191_p13 = scmp.lt.s32.totalorder %s1013_s17, 3 }
  0x24   : > { %p192_p2 = pnand %p711_p1, %p191_p13 }
  0x25   : > { %s1129_s28 = sand.u32 (!%p192_p2), 1, %s997_s13  }
  0x26   : > { %195 = sbr.rel (%p192_p2) target bundleno = 327 (0x147), region = 32  ;;  %s712_s29 = sshll.u32 (!%p192_p2), %s1129_s28, 6 }
  0x27   : > { %s198_s30 = scalar_lea.sflag (!%p192_p2), [#allocation4], %s1129_s28  ;;  %s1135_s4 = scalar_lea.vmem (!%p192_p2), [#allocation3], %s712_s29 }
  0x2b   : > { %984 = dma.done.wait (%p1092_p8), %s198_s30, 1024  }
  0x2c   : > { %986 = vsyncadd (%p1092_p8), %s198_s30, 4294966272  ;;  %p234_p12 = scmp.lt.s32.totalorder %s1005_s15, 1  ;;  %v259_v0 = vlaneseq  ;;  %v1018_v1 = vmov 839922192   ;;  %v1019_v4 = vmov 1985246804  }
  0x2d   : > { %v269_v2 = vunpack.c.l.s4 %v1018_v1  ;;  %v276_v5 = vunpack.c.l.s4 %v1019_v4  ;;  %v1020_v6 = vmov 0   ;;  %v1021_v9 = vmov 0.0   ;;  %v1147_v14 = vld [vmem:[%s1135_s4 + $0x20] sm:$0xff]  ;;  %v1150_v15 = vld [vmem:[%s1135_s4 + $0x28] sm:$0xff]  ;;  %v1153_v16 = vld [vmem:[%s1135_s4 + $0x30] sm:$0xff]  ;;  %s1191_s30 = scalar_lea.vmem [#allocation6], %s712_s29 }
  0x2e   : > { %s235_s5 = scalar_select %p234_p12, %s1005_s15, 1  ;;  %v260_v3 = vshrl.u32 %v259_v0, 7  ;;  %438 = vmatprep.mubr.bf16.mxu0 %v1020_v6  ;;  %458 = vmatprep.mubr.bf16.mxu1 %v1020_v6  ;;  %vm282_vm1 = vcmask 1041408   ;;  %v1156_v17 = vld [vmem:[%s1135_s4 + $0x38] sm:$0xff]  ;;  %v293_v18 = vld [vmem:[%s1135_s4] sm:$0xff]  ;;  %v294_v19 = vld [vmem:[%s1135_s4 + $0x8] sm:$0xff]  ;;  %v902_v29 = vpack.c.bf16 %v1153_v16, %v1147_v14 }
  0x2f   : > { %v270_v7 = vunpack.c.0.s8 %v269_v2  ;;  %v277_v8 = vunpack.c.0.s8 %v276_v5  ;;  %vm283_vm2 = vcmask 1045508   ;;  %v295_v22 = vld [vmem:[%s1135_s4 + $0x10] sm:$0xff]  ;;  %v296_v23 = vld [vmem:[%s1135_s4 + $0x18] sm:$0xff]  ;;  %v901_v28 = vpack.c.bf16 %v1156_v17, %v1150_v15  ;;  %v835_v39 = vld [vmem:[%s1261_s2 + $0x10] sm:$0xff]   ;;  %s755_s29 = sshll.u32 %s1005_s15, 10  ;;  %s599_s4 = sshll.u32 %s1191_s30, 4  ;;  %s1209_s4 = int_to_ptr.vmem [resolvable:$true] %s599_s4 }
  0x30   : > { %s749_s24 = sshll.u32 %s235_s5, 3  ;;  %vm262_vm0 = vcmp.eq.s32.totalorder %v260_v3, 0  ;;  %vm284_vm3 = vmor %vm282_vm1, %vm283_vm2  ;;  %v903_v30 = vpack.c.bf16 %v296_v23, %v294_v19  ;;  %v904_v33 = vpack.c.bf16 %v295_v22, %v293_v18  ;;  %v833_v38 = vld [vmem:[%s1261_s2] sm:$0xff]   ;;  %vm393_vm4 = vcmask 392192   ;;  %v834_v40 = vld [vmem:[%s1261_s2 + $0x8] sm:$0xff]   ;;  %s1207_s6 = scalar_lea.hbm %s1262_s3, %s755_s29 }
  0x31   : > { %v264_v10 = vsel %vm262_vm0, 1.0, %v1021_v9  ;;  %v273_v11 = vsub.s32 %v270_v7, %v260_v3  ;;  %s241_s8 = scalar_lea.vmem %s1259_s0, %s749_s24  ;;  %v280_v13 = vsub.s32 %v277_v8, %v260_v3  ;;  %416 = vmatprep.subr.bf16.mxu0 %v901_v28  ;;  %756 = vmatprep.subr.bf16.mxu1 %v901_v28  ;;  %v836_v41 = vld [vmem:[%s1261_s2 + $0x18] sm:$0xff]   ;;  %837 = vtanh.f32 %v293_v18  ;;  %s584_s7 = scalar_lea.sflag [#allocation5], %s1129_s28 }
  0x32   : > { %v266_v12 = vpack.c.bf16 %v1021_v9, %v264_v10  ;;  %v246_v24 = vld [vmem:[%s241_s8] sm:$0xff]  ;;  %417 = vmatpush1.bf16.msra.mxu0 %v902_v29  ;;  %759 = vmatpush1.bf16.msra.mxu1 %v902_v29  ;;  %839 = vtanh.f32 %v294_v19  ;;  %s933_s15 = scalar_lea.vmem %s1209_s4, 1024  ;;  %s1022_s8 = smov [#allocation6]  }
  0x33   : > { %v248_v25 = vcombine.high %v246_v24, %v246_v24  ;;  %418 = vmatprep.subr.bf16.mxu0 %v903_v30  ;;  %757 = vmatprep.subr.bf16.mxu1 %v903_v30  ;;  %841 = vtanh.f32 %v295_v22  ;;  %p934_p8 = scmp.ne.s32.totalorder %s1209_s4, %s933_s15  ;;  %s937_s9 = sshll.u32 %s1022_s8, 4  ;;  %s938_s9 = int_to_ptr.vmem [resolvable:$false] %s937_s9 }
  0x34   : > { %v274_v20 = vrot.slane %v266_v12, %v273_v11  ;;  %v281_v21 = vrot.slane %v266_v12, %v280_v13  ;;  %s939_s10 = scalar_lea.vmem %s938_s9, 2048  ;;  %p940_p3 = scmp.lt.s32.totalorder %s1209_s4, %s938_s9 }
  0x35   : > { %v750_v31 = vpack.c.bf16 %v248_v25, %v246_v24  ;;  %p935_p0 = pnand %p934_p8, %p1096_p9  ;;  %p941_p5 = scmp.lt.s32.totalorder %s939_s10, %s933_s15 }
  0x36   : > { %v285_v26 = vrot.slane %v274_v20, 6  ;;  %v287_v27 = vrot.slane %v281_v21, 6  ;;  %419 = vmatpush1.bf16.msra.mxu0 %v904_v33  ;;  %760 = vmatpush1.bf16.msra.mxu1 %v904_v33 }
  0x37   : > { %258 = vst [vmem:[#allocation2 + $0x28] sm:$0x33] %v750_v31  ;;  %p936_p1 = pneg %p935_p0  ;;  %p942_p6 = por %p941_p5, %p940_p3 }
  0x38   : > { %v286_v32 = vrot.slane %v285_v26, 4  ;;  %291 = vst [vmem:[#allocation2 + $0x28] sm:$0xcc] %v285_v26 }
  0x39   : > { %p943_p7 = pnand %p942_p6, %p936_p1 }
  0x3a   : > { %v288_v34 = vsel %vm284_vm3, %v286_v32, %v287_v27 }
  0x3e   : > { %v838_v59 = vpop.eup %837 }
  0x3f   : > { %v337_v35 = vld [vmem:[#allocation2 + $0x28] sm:$0xff]  ;;  %v840_v62 = vpop.eup %839 }
  0x40   : > { %v726_v36 = vcombine.high %v337_v35, %v288_v34  ;;  %v725_v37 = vcombine.low %v337_v35, %v288_v34  ;;  %v842_v0 = vpop.eup %841 }
  0x42   : > { %420 = vmatprep.subr.bf16.mxu0 %v726_v36  ;;  %758 = vmatprep.subr.bf16.mxu1 %v726_v36 }
  0x43   : > { %421 = vmatpush1.bf16.msra.mxu0 %v725_v37  ;;  %761 = vmatpush1.bf16.msra.mxu1 %v725_v37 }
  0x46   : > { %731 = vmatmul.mubr.msk.bf16.vlgmr.msra.gmra.mxu0 %vm393_vm4, %v833_v38  ;;  %733 = vmatmul.mubr.msk.bf16.vlgmr.msra.gmra.mxu1 %vm393_vm4, %v835_v39 }
  0x47   : > { %448 = vmatprep.mubr.bf16.mxu0 %v1020_v6  ;;  %468 = vmatprep.mubr.bf16.mxu1 %v1020_v6 }
  0x4e   : > { %732 = vmatmul.mubr.msk.bf16.gmra.mxu0 %vm393_vm4, %v834_v40  ;;  %734 = vmatmul.mubr.msk.bf16.gmra.mxu1 %vm393_vm4, %v836_v41 }
 0x106   : > { %v440_v42 = vpop.f32.mrf.mxu0  ;;  %v460_v43 = vpop.f32.mrf.mxu1 }
 0x107   : > { %v735_v44 = vmul.f32 -1.442695, %v440_v42 }
 0x108   : > { %v442_v45 = vpop.f32.mrf.mxu0  ;;  %v462_v46 = vpop.f32.mrf.mxu1 }
 0x109   : > { %843 = vpow2.f32 %v735_v44  ;;  %v736_v47 = vmul.f32 -1.442695, %v442_v45 }
 0x10a   : > { %v444_v48 = vpop.f32.mrf.mxu0  ;;  %845 = vtanh.f32 %v296_v23  ;;  %v464_v50 = vpop.f32.mrf.mxu1 }
 0x10b   : > { %847 = vpow2.f32 %v736_v47  ;;  %v737_v49 = vmul.f32 -1.442695, %v444_v48 }
 0x10c   : > { %v446_v51 = vpop.f32.mrf.mxu0  ;;  %849 = vtanh.f32 %v1147_v14  ;;  %v466_v55 = vpop.f32.mrf.mxu1 }
 0x10d   : > { %851 = vpow2.f32 %v737_v49  ;;  %v738_v52 = vmul.f32 -1.442695, %v446_v51 }
 0x10e   : > { %v450_v53 = vpop.f32.mrf.mxu0  ;;  %853 = vtanh.f32 %v1150_v15  ;;  %v470_v61 = vpop.f32.mrf.mxu1 }
 0x10f   : > { %855 = vpow2.f32 %v738_v52  ;;  %v739_v54 = vmul.f32 -1.442695, %v450_v53 }
 0x110   : > { %v452_v56 = vpop.f32.mrf.mxu0  ;;  %857 = vtanh.f32 %v1153_v16  ;;  %v472_v5 = vpop.f32.mrf.mxu1 }
 0x111   : > { %859 = vpow2.f32 %v739_v54  ;;  %v740_v57 = vmul.f32 -1.442695, %v452_v56 }
 0x112   : > { %861 = vtanh.f32 %v460_v43  ;;  %v454_v58 = vpop.f32.mrf.mxu0  ;;  %v474_v12 = vpop.f32.mrf.mxu1 }
 0x113   : > { %863 = vpow2.f32 %v740_v57  ;;  %v741_v60 = vmul.f32 -1.442695, %v454_v58 }
 0x114   : > { %865 = vtanh.f32 %v462_v46  ;;  %v456_v63 = vpop.f32.mrf.mxu0  ;;  %v476_v20 = vpop.f32.mrf.mxu1 }
 0x115   : > { %867 = vpow2.f32 %v741_v60  ;;  %v742_v1 = vmul.f32 -1.442695, %v456_v63 }
 0x116   : > { %v844_v2 = vpop.eup %843  ;;  %869 = vtanh.f32 %v464_v50 }
 0x117   : > { %v1182_v3 = vpop.eup %845  ;;  %v503_v4 = vadd.f32 1.0, %v844_v2  ;;  %871 = vpow2.f32 %v742_v1 }
 0x118   : > { %v848_v6 = vpop.eup %847  ;;  %873 = vtanh.f32 %v466_v55 }
 0x119   : > { %v1184_v7 = vpop.eup %849  ;;  %875 = vrcp.f32 %v503_v4  ;;  %v504_v8 = vadd.f32 1.0, %v848_v6 }
 0x11a   : > { %v852_v9 = vpop.eup %851  ;;  %877 = vtanh.f32 %v470_v61 }
 0x11b   : > { %v1186_v10 = vpop.eup %853  ;;  %879 = vrcp.f32 %v504_v8  ;;  %v505_v11 = vadd.f32 1.0, %v852_v9 }
 0x11c   : > { %v856_v13 = vpop.eup %855  ;;  %881 = vtanh.f32 %v1156_v17 }
 0x11d   : > { %v858_v14 = vpop.eup %857  ;;  %883 = vrcp.f32 %v505_v11  ;;  %v506_v15 = vadd.f32 1.0, %v856_v13 }
 0x11e   : > { %v860_v16 = vpop.eup %859  ;;  %885 = vtanh.f32 %v472_v5 }
 0x11f   : > { %v862_v18 = vpop.eup %861  ;;  %887 = vrcp.f32 %v506_v15  ;;  %v507_v19 = vadd.f32 1.0, %v860_v16 }
 0x120   : > { %v864_v21 = vpop.eup %863  ;;  %889 = vtanh.f32 %v474_v12  ;;  %v551_v26 = vsub.f32 %v838_v59, %v862_v18 }
 0x121   : > { %v866_v22 = vpop.eup %865  ;;  %891 = vrcp.f32 %v507_v19  ;;  %v508_v23 = vadd.f32 1.0, %v864_v21 }
 0x122   : > { %v868_v24 = vpop.eup %867  ;;  %893 = vtanh.f32 %v476_v20  ;;  %v552_v33 = vsub.f32 %v840_v62, %v866_v22 }
 0x123   : > { %v870_v25 = vpop.eup %869  ;;  %895 = vrcp.f32 %v508_v23  ;;  %v509_v17 = vadd.f32 1.0, %v868_v24 }
 0x124   : > { %v872_v27 = vpop.eup %871  ;;  %v553_v38 = vsub.f32 %v842_v0, %v870_v25 }
 0x125   : > { %v874_v28 = vpop.eup %873  ;;  %897 = vrcp.f32 %v509_v17  ;;  %v510_v29 = vadd.f32 1.0, %v872_v27 }
 0x126   : > { %v876_v30 = vpop.eup %875  ;;  %v554_v43 = vsub.f32 %v1182_v3, %v874_v28 }
 0x127   : > { %v878_v31 = vpop.eup %877  ;;  %v559_v32 = vmul.f32 %v876_v30, %v551_v26  ;;  %899 = vrcp.f32 %v510_v29 }
 0x128   : > { %v880_v34 = vpop.eup %879  ;;  %v555_v44 = vsub.f32 %v1184_v7, %v878_v31 }
 0x129   : > { %v882_v35 = vpop.eup %881  ;;  %v567_v36 = vadd.f32 %v862_v18, %v559_v32  ;;  %v560_v37 = vmul.f32 %v880_v34, %v552_v33 }
 0x12a   : > { %v884_v39 = vpop.eup %883 }
 0x12b   : > { %v886_v40 = vpop.eup %885  ;;  %575 = vst [vmem:[%s1191_s30] sm:$0xff] %v567_v36  ;;  %v568_v41 = vadd.f32 %v866_v22, %v560_v37  ;;  %v561_v42 = vmul.f32 %v884_v39, %v553_v38 }
 0x12c   : > { %v888_v45 = vpop.eup %887  ;;  %v556_v53 = vsub.f32 %v1186_v10, %v886_v40 }
 0x12d   : > { %v890_v46 = vpop.eup %889  ;;  %576 = vst [vmem:[%s1191_s30 + $0x8] sm:$0xff] %v568_v41  ;;  %v569_v47 = vadd.f32 %v870_v25, %v561_v42  ;;  %v562_v48 = vmul.f32 %v888_v45, %v554_v43 }
 0x12e   : > { %v892_v49 = vpop.eup %891  ;;  %v557_v57 = vsub.f32 %v858_v14, %v890_v46 }
 0x12f   : > { %v894_v50 = vpop.eup %893  ;;  %577 = vst [vmem:[%s1191_s30 + $0x10] sm:$0xff] %v569_v47  ;;  %v570_v51 = vadd.f32 %v874_v28, %v562_v48  ;;  %v563_v52 = vmul.f32 %v892_v49, %v555_v44 }
 0x130   : > { %v896_v54 = vpop.eup %895  ;;  %v558_v61 = vsub.f32 %v882_v35, %v894_v50 }
 0x131   : > { %578 = vst [vmem:[%s1191_s30 + $0x18] sm:$0xff] %v570_v51  ;;  %v571_v55 = vadd.f32 %v878_v31, %v563_v52  ;;  %v564_v56 = vmul.f32 %v896_v54, %v556_v53 }
 0x132   : > { %v898_v58 = vpop.eup %897 }
 0x133   : > { %579 = vst [vmem:[%s1191_s30 + $0x20] sm:$0xff] %v571_v55  ;;  %v572_v59 = vadd.f32 %v886_v40, %v564_v56  ;;  %v565_v60 = vmul.f32 %v898_v58, %v557_v57 }
 0x134   : > { %v900_v62 = vpop.eup %899 }
 0x135   : > { %580 = vst [vmem:[%s1191_s30 + $0x28] sm:$0xff] %v572_v59  ;;  %v573_v63 = vadd.f32 %v890_v46, %v565_v60  ;;  %v566_v0 = vmul.f32 %v900_v62, %v558_v61 }
 0x137   : > { %581 = vst [vmem:[%s1191_s30 + $0x30] sm:$0xff] %v573_v63  ;;  %v574_v1 = vadd.f32 %v894_v50, %v566_v0 }
 0x139   : > { %582 = vst [vmem:[%s1191_s30 + $0x38] sm:$0xff] %v574_v1 }
 0x13a   : > { %946 = shalt.err (!%p943_p7)
}
 0x13b   : > { %s947_s11 = scalar_lea.hbm %s1207_s6, 1024  ;;  %s951_s21 = scalar_lea.hbm %s1262_s3, 2048 }
 0x13c   : > { %p948_p10 = scmp.ne.s32.totalorder %s1207_s6, %s947_s11  ;;  %p952_p2 = scmp.lt.s32.totalorder %s1207_s6, %s1262_s3 }
 0x13d   : > { %p953_p12 = scmp.lt.s32.totalorder %s951_s21, %s947_s11 }
 0x13e   : > { %p949_p4 = pnand %p948_p10, %p1096_p9 }
 0x13f   : > { %p954_p8 = por %p953_p12, %p952_p2 }
 0x140   : > { %p950_p13 = pneg %p949_p4 }
 0x142   : > { %p955_p0 = pnand %p954_p8, %p950_p13 }
 0x144   : > { %958 = shalt.err (!%p955_p0)
}
 0x145   : > { %s1023_s30 = smov 256   ;;  %s1024_s29 = smov 16  }
 0x146   : > { %764 = dma.vmem_to_hbm [thread:$0]  (%p1096_p9), %s1209_s4, 1024, %s1207_s6, %s584_s7, %s1023_s30, %s1023_s30, %s1024_s29  }
 0x147 PF: > { %s614_s5 = sand.u32 1, %s993_s12   ;;  %p1268_p1 = scmp.ge.s32.totalorder %s1013_s17, 2 }
 0x148   : > { %s615_s24 = scalar_lea.sflag [#allocation5], %s614_s5 }
 0x149   : > { %p771_p3 = pnand %p1268_p1, %p1103_p11 }
 0x14b   : > { %p772_p5 = pneg %p771_p3 }
 0x14d   : > { %988 = dma.done.wait (%p772_p5), %s615_s24, 1024  }
 0x14e   : > { %990 = vsyncadd (%p772_p5), %s615_s24, 4294966272  ;;  %s19_s17 = sadd.s32 1, %s1013_s17   ;;  %s1269_s12 = smov %s997_s13 }
 0x14f   : > { %p16_p6 = scmp.ge.s32.totalorder %s19_s17, 4   ;;  %s1270_s13 = smov %s1001_s14 }
 0x150   : > { %s1271_s14 = smov %s1101_s26  ;;  %s1272_s15 = smov %s1009_s16 }
 0x151   : > { %s1273_s16 = smov %s1275_s20  ;;  %18 = sbr.rel (!%p16_p6) target bundleno = 6 (0x6), region = 80 }
 0x156   :  { %620 = vsyncpa [#allocation4], 1 }
 0x157   :  { %622 = vsyncpa [#allocation4 + $0x1], 1 }
 0x158   :  { %623 = vsyncpa [#allocation5], 1 }
 0x159   :  { %625 = vsyncpa [#allocation5 + $0x1], 1 }

</bundles_post_ra>
